<compile_context>
chip_gen: v7x
topology: tpu7x:2x2x1
jax: 0.10.0
libtpu: 0.0.40
codegen_flags: <defaults>
</compile_context>

<pallas_src>
import jax
import jax.numpy as jnp
from jax.experimental import pallas as pl
from jax.experimental.pallas import tpu as pltpu


def _norm_kernel(scale_ref, bias_ref, x_ref, o_ref):
    # scale_ref / bias_ref: VMEM f32, shape (row_tile, 1)
    # x_ref / o_ref:        VMEM,     shape (row_tile, col_tile)
    x = x_ref[...].astype(jnp.float32)
    y = x * scale_ref[...] + bias_ref[...]
    o_ref[...] = y.astype(o_ref.dtype)


def _pick_tile(dim, align, max_tile):
    """Pick a tile for one dim.

    Preference order:
      1. full dim if it is small (<= align)                      -> always legal
      2. largest multiple of `align` <= min(dim, max_tile) that
         exactly divides dim                                      -> no masked edge
      3. largest multiple of `align` <= min(dim, max_tile)        -> masked edge block
    """
    if dim <= align:
        return dim
    limit = min(dim, max_tile)
    top = (limit // align) * align
    t = top
    while t >= align:
        if dim % t == 0:
            return t
        t -= align
    return top


def normalisation(x, means, stdevs):
    """x: (N, C, H, W) array; means/stdevs: (C,) arrays (math done in float32)."""
    N, C, H, W = x.shape
    NR, L = N * C, H * W

    means_f32 = jnp.asarray(means, dtype=jnp.float32).reshape((C,))
    stdevs_f32 = jnp.asarray(stdevs, dtype=jnp.float32).reshape((C,))

    # (x - m) / s == x * (1/s) + (-m/s)
    scale = 1.0 / stdevs_f32
    bias = -means_f32 * scale

    # One row per (n, c) slab -> per-row column vectors for the FMA constants.
    scale_col = jnp.tile(scale, N).reshape(NR, 1)
    bias_col = jnp.tile(bias, N).reshape(NR, 1)

    # Lane-dense 2-D view of the data (contiguous in HBM, reshape is free).
    x2 = x.reshape(NR, L)

    # Tile selection: lane dim a multiple of 128 (up to 2048), row dim a
    # multiple of 8, with the x block capped at ~2 MiB.
    itemsize = jnp.dtype(x.dtype).itemsize
    col_tile = _pick_tile(L, 128, 2048)
    row_budget = max(8, (2 * 1024 * 1024) // max(1, col_tile * itemsize))
    row_tile = _pick_tile(NR, 8, row_budget)

    grid = (pl.cdiv(NR, row_tile), pl.cdiv(L, col_tile))

    out2 = pl.pallas_call(
        _norm_kernel,
        out_shape=jax.ShapeDtypeStruct((NR, L), x.dtype),
        grid=grid,
        in_specs=[
            pl.BlockSpec((row_tile, 1), lambda i, j: (i, 0)),          # scale
            pl.BlockSpec((row_tile, 1), lambda i, j: (i, 0)),          # bias
            pl.BlockSpec((row_tile, col_tile), lambda i, j: (i, j)),   # x
        ],
        out_specs=pl.BlockSpec((row_tile, col_tile), lambda i, j: (i, j)),
        compiler_params=pltpu.CompilerParams(
            dimension_semantics=("parallel", "parallel"),
            vmem_limit_bytes=64 * 1024 * 1024,
        ),
    )(scale_col, bias_col, x2)

    return out2.reshape(N, C, H, W)


if __name__ == "__main__":
    # ImageNet-style normalisation constants (the module hard-codes 3 channels).
    means = jnp.array([0.485, 0.456, 0.406], dtype=jnp.float32)
    stdevs = jnp.array([0.229, 0.224, 0.225], dtype=jnp.float32)

    key = jax.random.PRNGKey(0)
    x = jax.random.normal(key, (2, 3, 16, 16), dtype=jnp.float32)

    out = normalisation(x, means, stdevs)
    out = jax.block_until_ready(out)

    # Reference (same broadcasting as the PyTorch module).
    ref = (x - means.reshape(1, 3, 1, 1)) / stdevs.reshape(1, 3, 1, 1)
    assert out.shape == x.shape and out.dtype == x.dtype
    # FMA (x*1/s - m/s) differs from (x-m)/s only in the last ulp.
    assert jnp.allclose(out, ref, atol=1e-5, rtol=1e-5)

    print("KERNEL_OK")
</pallas_src>

<mosaic_0001>
module attributes {stable_mosaic.version = 11 : i64} {
  func.func @_norm_kernel(%arg0: i32, %arg1: i32, %arg2: memref<6x1xf32, #tpu.memory_space<vmem>>, %arg3: memref<6x1xf32, #tpu.memory_space<vmem>>, %arg4: memref<6x256xf32, #tpu.memory_space<vmem>>, %arg5: memref<6x256xf32, #tpu.memory_space<vmem>>) attributes {dimension_semantics = [#tpu.dimension_semantics<parallel>, #tpu.dimension_semantics<parallel>], iteration_bounds = array<i64: 1, 1>, scalar_prefetch = 0 : i64, scratch_operands = 0 : i64, tpu.core_type = #tpu.core_type<tc>, window_params = [{transform_indices = @transform_0, window_bounds = array<i64: 6, 1>}, {transform_indices = @transform_1, window_bounds = array<i64: 6, 1>}, {transform_indices = @transform_2, window_bounds = array<i64: 6, 256>}, {transform_indices = @transform_3, window_bounds = array<i64: 6, 256>}]} {
    %c0 = arith.constant 0 : index
    %c0_0 = arith.constant 0 : index
    %0 = vector.load %arg4[%c0, %c0_0] : memref<6x256xf32, #tpu.memory_space<vmem>>, vector<6x256xf32>
    %c0_1 = arith.constant 0 : index
    %c0_2 = arith.constant 0 : index
    %1 = vector.load %arg2[%c0_1, %c0_2] : memref<6x1xf32, #tpu.memory_space<vmem>>, vector<6x1xf32>
    %2 = vector.broadcast %1 : vector<6x1xf32> to vector<6x256xf32>
    %3 = arith.mulf %0, %2 : vector<6x256xf32>
    %c0_3 = arith.constant 0 : index
    %c0_4 = arith.constant 0 : index
    %4 = vector.load %arg3[%c0_3, %c0_4] : memref<6x1xf32, #tpu.memory_space<vmem>>, vector<6x1xf32>
    %5 = vector.broadcast %4 : vector<6x1xf32> to vector<6x256xf32>
    %6 = arith.addf %3, %5 : vector<6x256xf32>
    %c0_5 = arith.constant 0 : index
    %c0_6 = arith.constant 0 : index
    %7 = vector.load %arg5[%c0_5, %c0_6] : memref<6x256xf32, #tpu.memory_space<vmem>>, vector<6x256xf32>
    tpu.vector_store %arg5[%c0_5, %c0_6], %6 {strides = array<i32>} : memref<6x256xf32, #tpu.memory_space<vmem>>, vector<6x256xf32>,
    return
  }
  func.func @transform_0(%arg0: i32, %arg1: i32) -> (i32, i32) {
    %c0_i32 = arith.constant 0 : i32
    %c0_i32_0 = arith.constant 0 : i32
    return %arg0, %c0_i32 : i32, i32
  }
  func.func @transform_1(%arg0: i32, %arg1: i32) -> (i32, i32) {
    %c0_i32 = arith.constant 0 : i32
    %c0_i32_0 = arith.constant 0 : i32
    return %arg0, %c0_i32 : i32, i32
  }
  func.func @transform_2(%arg0: i32, %arg1: i32) -> (i32, i32) {
    %c0_i32 = arith.constant 0 : i32
    return %arg0, %arg1 : i32, i32
  }
  func.func @transform_3(%arg0: i32, %arg1: i32) -> (i32, i32) {
    %c0_i32 = arith.constant 0 : i32
    return %arg0, %arg1 : i32, i32
  }
}

</mosaic_0001>

<bundles_post_ra>
// kernel: tpu_custom_call.1
= control target key start
LH: loop header
LB: loop body
LE: loop exit
PB: predicated region body
PF: predicated region fallthrough
CT: control target
= control target key end

     0   :  { %8 = vsyncpa [#allocation3], 0  ;;  %s259_s0 = inlined_call_operand.hbm [shape: f32[6,1], index: 0, kind: input, shape index: {}]   ;;  %s260_s1 = inlined_call_operand.hbm [shape: f32[6,1], index: 1, kind: input, shape index: {}]   ;;  %s261_s2 = inlined_call_operand.hbm [shape: f32[6,256], index: 2, kind: input, shape index: {}]   ;;  %s262_s3 = inlined_call_operand.hbm [shape: f32[6,256], index: 3, kind: output, shape index: {}]  }
   0x1   :  { %9 = vsyncpa [#allocation6], 0 }
   0x2   :  { %10 = vsyncpa [#allocation4], 0  ;;  %s186_s12 = smov [#allocation5]   ;;  %s187_s14 = smov [#allocation2]  }
   0x3   :  { %s27_s13 = sshll.u32 %s186_s12, 4  ;;  %s17_s15 = sshll.u32 %s187_s14, 4  ;;  %s28_s13 = int_to_ptr.vmem [resolvable:$true] %s27_s13  ;;  %s18_s15 = int_to_ptr.vmem [resolvable:$true] %s17_s15 }
   0x4   :  { %s92_s18 = scalar_lea.hbm %s260_s1, 128 }
   0x5   :  { %p93_p0 = scmp.ne.s32.totalorder %s260_s1, %s92_s18  ;;  %p96_p1 = scmp.lt.u32.totalorder %s92_s18, %s260_s1 }
   0x7   :  { %p98_p2 = pnand %p96_p1, %p93_p0 }
   0x9   :  { %101 = shalt.err (!%p98_p2)
}
   0xa   :  { %s102_s23 = scalar_lea.vmem %s28_s13, 128  ;;  %p107_p4 = scmp.lt.s32.totalorder %s28_s13, %s28_s13 }
   0xb   :  { %p103_p3 = scmp.ne.s32.totalorder %s28_s13, %s102_s23  ;;  %p108_p5 = scmp.lt.s32.totalorder %s102_s23, %s102_s23 }
   0xd   :  { %p109_p6 = por %p108_p5, %p107_p4 }
   0xf   :  { %p110_p7 = pnand %p109_p6, %p103_p3 }
  0x11   :  { %113 = shalt.err (!%p110_p7)
}
  0x12   :  { %30 = dma.hbm_to_vmem [thread:$0]  %s260_s1, 128, %s28_s13, [#allocation6]  }
  0x13   :  { %s114_s28 = scalar_lea.hbm %s259_s0, 128 }
  0x14   :  { %p115_p8 = scmp.ne.s32.totalorder %s259_s0, %s114_s28  ;;  %p118_p9 = scmp.lt.u32.totalorder %s114_s28, %s259_s0 }
  0x16   :  { %p120_p10 = pnand %p118_p9, %p115_p8 }
  0x18   :  { %123 = shalt.err (!%p120_p10)
}
  0x19   :  { %s124_s6 = scalar_lea.vmem %s18_s15, 128  ;;  %p129_p12 = scmp.lt.s32.totalorder %s18_s15, %s18_s15 }
  0x1a   :  { %p125_p11 = scmp.ne.s32.totalorder %s18_s15, %s124_s6  ;;  %p130_p13 = scmp.lt.s32.totalorder %s124_s6, %s124_s6 }
  0x1c   :  { %p131_p0 = por %p130_p13, %p129_p12 }
  0x1e   :  { %p132_p1 = pnand %p131_p0, %p125_p11 }
  0x20   :  { %135 = shalt.err (!%p132_p1)
}
  0x21   :  { %20 = dma.hbm_to_vmem [thread:$0]  %s259_s0, 128, %s18_s15, [#allocation3]  }
  0x22   :  { %s188_s8 = smov [#allocation7]   ;;  %s136_s12 = scalar_lea.hbm %s261_s2, 256 }
  0x23   :  { %s37_s9 = sshll.u32 %s188_s8, 4  ;;  %p137_p2 = scmp.ne.s32.totalorder %s261_s2, %s136_s12  ;;  %s38_s9 = int_to_ptr.vmem [resolvable:$true] %s37_s9 }
  0x24   :  { %p140_p3 = scmp.lt.u32.totalorder %s136_s12, %s261_s2 }
  0x26   :  { %p142_p4 = pnand %p140_p3, %p137_p2 }
  0x28   :  { %145 = shalt.err (!%p142_p4)
}
  0x29   :  { %s146_s18 = scalar_lea.vmem %s38_s9, 256  ;;  %p151_p6 = scmp.lt.s32.totalorder %s38_s9, %s38_s9 }
  0x2a   :  { %p147_p5 = scmp.ne.s32.totalorder %s38_s9, %s146_s18  ;;  %p152_p7 = scmp.lt.s32.totalorder %s146_s18, %s146_s18 }
  0x2c   :  { %p153_p8 = por %p152_p7, %p151_p6 }
  0x2e   :  { %p154_p9 = pnand %p153_p8, %p147_p5 }
  0x30   :  { %157 = shalt.err (!%p154_p9)
}
  0x31   :  { %40 = dma.hbm_to_vmem [thread:$0]  %s261_s2, 256, %s38_s9, [#allocation6]  }
  0x32   :  { %180 = dma.done.wait [#allocation3], 128  }
  0x33   :  { %181 = vsyncadd [#allocation3], 4294967168 }
  0x34   :  { %182 = dma.done.wait [#allocation6], 384  }
  0x35   :  { %183 = vsyncadd [#allocation6], 4294966912  ;;  %v189_v0 = vmov 0   ;;  %v52_v1 = vld [vmem:[#allocation2] sm:$0x3f]  ;;  %s190_s19 = smov [#allocation8]  }
  0x36   :  { %91 = vset.pattern.permute.xlu0 %v189_v0  ;;  %v60_v2 = vld [vmem:[#allocation5] sm:$0x3f]  ;;  %v50_v4 = vld [vmem:[#allocation7] sm:$0x3f]  ;;  %v51_v5 = vld [vmem:[#allocation7 + $0x8] sm:$0x3f] }
  0x37   :  { %55 = vperm.xlu0 %91, %v52_v1   ;;  %s76_s20 = sshll.u32 %s190_s19, 4  ;;  %s77_s20 = int_to_ptr.vmem [resolvable:$true] %s76_s20 }
  0x38   :  { %s158_s2 = scalar_lea.vmem %s77_s20, 256  ;;  %p163_p11 = scmp.lt.s32.totalorder %s77_s20, %s77_s20 }
  0x39   :  { %p159_p10 = scmp.ne.s32.totalorder %s77_s20, %s158_s2  ;;  %p164_p12 = scmp.lt.s32.totalorder %s158_s2, %s158_s2 }
  0x3b   :  { %63 = vperm.xlu0 %91, %v60_v2   ;;  %p165_p13 = por %p164_p12, %p163_p11 }
  0x3d   :  { %p166_p0 = pnand %p165_p13, %p159_p10 }
  0xb6   :  { %v56_v3 = vpop.permute.xlu0 %55 }
  0xb7   :  { %v58_v6 = vmul.f32 %v56_v3, %v50_v4  ;;  %v59_v7 = vmul.f32 %v56_v3, %v51_v5 }
  0xba   :  { %v64_v8 = vpop.permute.xlu0 %63 }
  0xbb   :  { %v66_v9 = vadd.f32 %v64_v8, %v58_v6  ;;  %v67_v10 = vadd.f32 %v64_v8, %v59_v7 }
  0xbd   :  { %68 = vst [vmem:[#allocation8] sm:$0x3f] %v66_v9  ;;  %69 = vst [vmem:[#allocation8 + $0x8] sm:$0x3f] %v67_v10 }
  0xbe   :  { %169 = shalt.err (!%p166_p0)
}
  0xbf   :  { %s170_s23 = scalar_lea.hbm %s262_s3, 256 }
  0xc0   :  { %p171_p1 = scmp.ne.s32.totalorder %s262_s3, %s170_s23  ;;  %p174_p2 = scmp.lt.u32.totalorder %s170_s23, %s262_s3 }
  0xc2   :  { %p176_p3 = pnand %p174_p2, %p171_p1 }
  0xc4   :  { %179 = shalt.err (!%p176_p3)
}
  0xc5   :  { %79 = dma.vmem_to_hbm [thread:$0]  %s77_s20, 256, %s262_s3, [#allocation4]  }
  0xc6   :  { %184 = dma.done.wait [#allocation4], 256  }
  0xc7   :  { %185 = vsyncadd [#allocation4], 4294967040 }
  0xc8   :  { %83 = vsyncpa [#allocation3], 1 }
  0xc9   :  { %84 = vsyncpa [#allocation6], 1 }
  0xca   :  { %85 = vsyncpa [#allocation4], 1 }

</bundles_post_ra>
